<compile_context>
chip_gen: v7x
topology: tpu7x:2x2x1
jax: 0.10.0
libtpu: 0.0.40
codegen_flags: <defaults>
</compile_context>

<pallas_src>
import functools

import jax
import jax.numpy as jnp
from jax.experimental import pallas as pl
from jax.experimental.pallas import tpu as pltpu

_LANES = 128  # vreg lane width: batch lives on this axis.


def _mlp_kernel(x_ref,
                w1_ref, b1_ref,
                w2_ref, b2_ref,
                w3_ref, b3_ref,
                w4_ref, b4_ref,
                o_ref):
    """Fused MLP forward in feature-major layout.

    x_ref  : (in_size,  tile)   batch on the 128-lane axis
    wN_ref : (out_N, in_N)      torch-native nn.Linear weight layout
    bN_ref : (out_N, 1)         broadcasts over the lane (batch) axis
    o_ref  : (out_size, tile)

    Computes o = W4 @ tanh(W3 @ tanh(W2 @ tanh(W1 @ x + b1) + b2) + b3) + b4.
    """
    w_dtype = w1_ref.dtype  # f32, or bf16 when use_bf16=True

    h = x_ref[...]
    h = jnp.dot(w1_ref[...], h.astype(w_dtype),
                preferred_element_type=jnp.float32) + b1_ref[...]
    h = jnp.tanh(h)

    h = jnp.dot(w2_ref[...], h.astype(w_dtype),
                preferred_element_type=jnp.float32) + b2_ref[...]
    h = jnp.tanh(h)

    h = jnp.dot(w3_ref[...], h.astype(w_dtype),
                preferred_element_type=jnp.float32) + b3_ref[...]
    h = jnp.tanh(h)

    h = jnp.dot(w4_ref[...], h.astype(w_dtype),
                preferred_element_type=jnp.float32) + b4_ref[...]

    o_ref[...] = h.astype(o_ref.dtype)


def _round_up(x, m):
    return (x + m - 1) // m * m


@functools.partial(jax.jit, static_argnames=("block_rows", "use_bf16"))
def mlp_uint_forward(x, params, *, block_rows=4096, use_bf16=False):
    """Run the fused MLP Pallas kernel.

    x: (B, input_size) float32
    params: dict with torch-native weights w1..w4 of shape (out, in) and
            biases b1..b4 of shape (out,).
    block_rows: max batch-rows per grid step (rounded to a multiple of 128).
    use_bf16: run the MXU dots in bf16 (f32 accumulation); valid on v5e too.
    """
    batch, in_size = x.shape
    h1 = params["w1"].shape[0]
    h2 = params["w2"].shape[0]
    h3 = params["w3"].shape[0]
    out_size = params["w4"].shape[0]

    w_dtype = jnp.bfloat16 if use_bf16 else jnp.float32
    weights = [params[f"w{i}"].astype(w_dtype) for i in range(1, 5)]
    biases = [params[f"b{i}"].astype(jnp.float32).reshape(-1, 1)
              for i in range(1, 5)]

    # --- batch tiling on the lane axis ------------------------------------
    block_rows = max(_LANES, _round_up(block_rows, _LANES))
    b_lanes = _round_up(batch, _LANES)          # batch padded to whole vreg lanes
    tile = min(block_rows, b_lanes)
    if b_lanes >= 2 * _LANES:
        # Keep >= 2 grid steps so v7x's two TensorCores both get a shard of
        # the "parallel" batch axis (harmless on single-TC v5e / v6e).
        half = _round_up(-(-b_lanes // 2), _LANES)
        tile = min(tile, half)
    padded = _round_up(b_lanes, tile)
    grid = (padded // tile,)

    # Feature-major input: (in_size, padded) with batch on lanes; pad rows
    # are zeros and are sliced off at the end (tanh keeps them bounded).
    x_t = x.astype(w_dtype).T
    if padded != batch:
        x_t = jnp.pad(x_t, ((0, 0), (0, padded - batch)))

    def col_block(i):        # x / out: tiled along the lane (batch) axis
        return (0, i)

    def const_block(i):      # weights / biases: single VMEM-resident block
        return (0, 0)

    in_specs = [pl.BlockSpec((in_size, tile), col_block)]
    args = [x_t]
    for w, b in zip(weights, biases):
        in_specs.append(pl.BlockSpec(w.shape, const_block))
        in_specs.append(pl.BlockSpec(b.shape, const_block))
        args.extend([w, b])

    flops = 2 * padded * (in_size * h1 + h1 * h2 + h2 * h3 + h3 * out_size)
    transcendentals = padded * (h1 + h2 + h3)
    bytes_accessed = (
        x_t.size * x_t.dtype.itemsize
        + sum(w.size * w.dtype.itemsize for w in weights)
        + sum(b.size * b.dtype.itemsize for b in biases)
        + padded * out_size * 4)

    out_t = pl.pallas_call(
        _mlp_kernel,
        out_shape=jax.ShapeDtypeStruct((out_size, padded), jnp.float32),
        grid=grid,
        in_specs=in_specs,
        out_specs=pl.BlockSpec((out_size, tile), col_block),
        compiler_params=pltpu.CompilerParams(
            dimension_semantics=("parallel",)),
        cost_estimate=pl.CostEstimate(
            flops=flops,
            transcendentals=transcendentals,
            bytes_accessed=bytes_accessed),
    )(*args)

    # Back to (batch, out_size); drop lane padding.
    return out_t[:, :batch].T


def init_params(key, input_size, h1, h2, h3, out_size):
    """nn.Linear-style init; weights stored torch-native as (out, in)."""
    ks = jax.random.split(key, 8)
    dims = [(input_size, h1), (h1, h2), (h2, h3), (h3, out_size)]
    params = {}
    for i, (fan_in, fan_out) in enumerate(dims, start=1):
        bound = 1.0 / jnp.sqrt(fan_in)
        params[f"w{i}"] = jax.random.uniform(
            ks[2 * (i - 1)], (fan_out, fan_in), jnp.float32, -bound, bound)
        params[f"b{i}"] = jax.random.uniform(
            ks[2 * (i - 1) + 1], (fan_out,), jnp.float32, -bound, bound)
    return params


def mlp_uint_reference(x, params):
    h = jnp.tanh(x @ params["w1"].T + params["b1"])
    h = jnp.tanh(h @ params["w2"].T + params["b2"])
    h = jnp.tanh(h @ params["w3"].T + params["b3"])
    return h @ params["w4"].T + params["b4"]


if __name__ == "__main__":
    # Sizes implied by the module config:
    #   input_size = common.history_seq_len
    #   h1/h2/h3   = unit.layerN.hidden_num
    #   out_size   = aemlp.encode_size
    input_size = 16
    h1, h2, h3 = 32, 32, 16
    out_size = 8

    key = jax.random.PRNGKey(0)
    k_p, k_x, k_x2 = jax.random.split(key, 3)
    params = init_params(k_p, input_size, h1, h2, h3, out_size)

    # Case 1: tiny batch (single grid step, lane-padding path).
    batch = 8
    x = jax.random.normal(k_x, (batch, input_size), jnp.float32)
    out = jax.block_until_ready(mlp_uint_forward(x, params))
    ref = mlp_uint_reference(x, params)
    assert out.shape == (batch, out_size)
    assert jnp.allclose(out, ref, atol=1e-5, rtol=1e-5), "mismatch vs reference (batch=8)"

    # Case 2: non-aligned batch with a multi-step grid (>= 2 parallel steps,
    # exercises padding + the two-TensorCore sharding path on v7x).
    batch2 = 300
    x2 = jax.random.normal(k_x2, (batch2, input_size), jnp.float32)
    out2 = jax.block_until_ready(mlp_uint_forward(x2, params))
    ref2 = mlp_uint_reference(x2, params)
    assert out2.shape == (batch2, out_size)
    assert jnp.allclose(out2, ref2, atol=1e-5, rtol=1e-5), "mismatch vs reference (batch=300)"

    # Case 3: bf16 MXU path (f32 accumulation / bias / tanh).  Looser
    # tolerance: x and intermediates are rounded to bf16 before each dot.
    out3 = jax.block_until_ready(mlp_uint_forward(x2, params, use_bf16=True))
    assert out3.shape == (batch2, out_size)
    assert jnp.allclose(out3, ref2, atol=5e-2, rtol=5e-2), "mismatch vs reference (bf16)"

    print("KERNEL_OK")
</pallas_src>

<mosaic_0001>
module attributes {stable_mosaic.version = 11 : i64} {
  func.func @_mlp_kernel(%arg0: i32, %arg1: memref<16x128xf32, #tpu.memory_space<vmem>>, %arg2: memref<32x16xf32, #tpu.memory_space<vmem>>, %arg3: memref<32x1xf32, #tpu.memory_space<vmem>>, %arg4: memref<32x32xf32, #tpu.memory_space<vmem>>, %arg5: memref<32x1xf32, #tpu.memory_space<vmem>>, %arg6: memref<16x32xf32, #tpu.memory_space<vmem>>, %arg7: memref<16x1xf32, #tpu.memory_space<vmem>>, %arg8: memref<8x16xf32, #tpu.memory_space<vmem>>, %arg9: memref<8x1xf32, #tpu.memory_space<vmem>>, %arg10: memref<8x128xf32, #tpu.memory_space<vmem>>) attributes {dimension_semantics = [#tpu.dimension_semantics<parallel>], iteration_bounds = array<i64: 1>, scalar_prefetch = 0 : i64, scratch_operands = 0 : i64, tpu.core_type = #tpu.core_type<tc>, window_params = [{transform_indices = @transform_0, window_bounds = array<i64: 16, 128>}, {pipeline_mode = #tpu.pipeline_mode<synchronous>, transform_indices = @transform_1, window_bounds = array<i64: 32, 16>}, {pipeline_mode = #tpu.pipeline_mode<synchronous>, transform_indices = @transform_2, window_bounds = array<i64: 32, 1>}, {pipeline_mode = #tpu.pipeline_mode<synchronous>, transform_indices = @transform_3, window_bounds = array<i64: 32, 32>}, {pipeline_mode = #tpu.pipeline_mode<synchronous>, transform_indices = @transform_4, window_bounds = array<i64: 32, 1>}, {pipeline_mode = #tpu.pipeline_mode<synchronous>, transform_indices = @transform_5, window_bounds = array<i64: 16, 32>}, {pipeline_mode = #tpu.pipeline_mode<synchronous>, transform_indices = @transform_6, window_bounds = array<i64: 16, 1>}, {pipeline_mode = #tpu.pipeline_mode<synchronous>, transform_indices = @transform_7, window_bounds = array<i64: 8, 16>}, {pipeline_mode = #tpu.pipeline_mode<synchronous>, transform_indices = @transform_8, window_bounds = array<i64: 8, 1>}, {transform_indices = @transform_9, window_bounds = array<i64: 8, 128>}]} {
    %c0 = arith.constant 0 : index
    %c0_0 = arith.constant 0 : index
    %0 = vector.load %arg1[%c0, %c0_0] : memref<16x128xf32, #tpu.memory_space<vmem>>, vector<16x128xf32>
    %c0_1 = arith.constant 0 : index
    %c0_2 = arith.constant 0 : index
    %1 = vector.load %arg2[%c0_1, %c0_2] : memref<32x16xf32, #tpu.memory_space<vmem>>, vector<32x16xf32>
    %cst = arith.constant dense<0.000000e+00> : vector<32x128xf32>
    %2 = tpu.matmul %1, %0, %cst {dimension_numbers = #tpu.dot_dimension_numbers<[1], [0], [0], [1], [0, 0, 1, 1], [], []>} : vector<32x16xf32>, vector<16x128xf32>, vector<32x128xf32> -> vector<32x128xf32>
    %c0_3 = arith.constant 0 : index
    %c0_4 = arith.constant 0 : index
    %3 = vector.load %arg3[%c0_3, %c0_4] : memref<32x1xf32, #tpu.memory_space<vmem>>, vector<32x1xf32>
    %4 = vector.broadcast %3 : vector<32x1xf32> to vector<32x128xf32>
    %5 = arith.addf %2, %4 : vector<32x128xf32>
    %6 = math.tanh %5 : vector<32x128xf32>
    %c0_5 = arith.constant 0 : index
    %c0_6 = arith.constant 0 : index
    %7 = vector.load %arg4[%c0_5, %c0_6] : memref<32x32xf32, #tpu.memory_space<vmem>>, vector<32x32xf32>
    %cst_7 = arith.constant dense<0.000000e+00> : vector<32x128xf32>
    %8 = tpu.matmul %7, %6, %cst_7 {dimension_numbers = #tpu.dot_dimension_numbers<[1], [0], [0], [1], [0, 0, 1, 1], [], []>} : vector<32x32xf32>, vector<32x128xf32>, vector<32x128xf32> -> vector<32x128xf32>
    %c0_8 = arith.constant 0 : index
    %c0_9 = arith.constant 0 : index
    %9 = vector.load %arg5[%c0_8, %c0_9] : memref<32x1xf32, #tpu.memory_space<vmem>>, vector<32x1xf32>
    %10 = vector.broadcast %9 : vector<32x1xf32> to vector<32x128xf32>
    %11 = arith.addf %8, %10 : vector<32x128xf32>
    %12 = math.tanh %11 : vector<32x128xf32>
    %c0_10 = arith.constant 0 : index
    %c0_11 = arith.constant 0 : index
    %13 = vector.load %arg6[%c0_10, %c0_11] : memref<16x32xf32, #tpu.memory_space<vmem>>, vector<16x32xf32>
    %cst_12 = arith.constant dense<0.000000e+00> : vector<16x128xf32>
    %14 = tpu.matmul %13, %12, %cst_12 {dimension_numbers = #tpu.dot_dimension_numbers<[1], [0], [0], [1], [0, 0, 1, 1], [], []>} : vector<16x32xf32>, vector<32x128xf32>, vector<16x128xf32> -> vector<16x128xf32>
    %c0_13 = arith.constant 0 : index
    %c0_14 = arith.constant 0 : index
    %15 = vector.load %arg7[%c0_13, %c0_14] : memref<16x1xf32, #tpu.memory_space<vmem>>, vector<16x1xf32>
    %16 = vector.broadcast %15 : vector<16x1xf32> to vector<16x128xf32>
    %17 = arith.addf %14, %16 : vector<16x128xf32>
    %18 = math.tanh %17 : vector<16x128xf32>
    %c0_15 = arith.constant 0 : index
    %c0_16 = arith.constant 0 : index
    %19 = vector.load %arg8[%c0_15, %c0_16] : memref<8x16xf32, #tpu.memory_space<vmem>>, vector<8x16xf32>
    %cst_17 = arith.constant dense<0.000000e+00> : vector<8x128xf32>
    %20 = tpu.matmul %19, %18, %cst_17 {dimension_numbers = #tpu.dot_dimension_numbers<[1], [0], [0], [1], [0, 0, 1, 1], [], []>} : vector<8x16xf32>, vector<16x128xf32>, vector<8x128xf32> -> vector<8x128xf32>
    %c0_18 = arith.constant 0 : index
    %c0_19 = arith.constant 0 : index
    %21 = vector.load %arg9[%c0_18, %c0_19] : memref<8x1xf32, #tpu.memory_space<vmem>>, vector<8x1xf32>
    %22 = vector.broadcast %21 : vector<8x1xf32> to vector<8x128xf32>
    %23 = arith.addf %20, %22 : vector<8x128xf32>
    %c0_20 = arith.constant 0 : index
    %c0_21 = arith.constant 0 : index
    %24 = vector.load %arg10[%c0_20, %c0_21] : memref<8x128xf32, #tpu.memory_space<vmem>>, vector<8x128xf32>
    tpu.vector_store %arg10[%c0_20, %c0_21], %23 {strides = array<i32>} : memref<8x128xf32, #tpu.memory_space<vmem>>, vector<8x128xf32>,
    return
  }
  func.func @transform_0(%arg0: i32) -> (i32, i32) {
    %c0_i32 = arith.constant 0 : i32
    %c0_i32_0 = arith.constant 0 : i32
    return %c0_i32, %arg0 : i32, i32
  }
  func.func @transform_1(%arg0: i32) -> (i32, i32) {
    %c0_i32 = arith.constant 0 : i32
    %c0_i32_0 = arith.constant 0 : i32
    %c0_i32_1 = arith.constant 0 : i32
    return %c0_i32, %c0_i32_0 : i32, i32
  }
  func.func @transform_2(%arg0: i32) -> (i32, i32) {
    %c0_i32 = arith.constant 0 : i32
    %c0_i32_0 = arith.constant 0 : i32
    %c0_i32_1 = arith.constant 0 : i32
    return %c0_i32, %c0_i32_0 : i32, i32
  }
  func.func @transform_3(%arg0: i32) -> (i32, i32) {
    %c0_i32 = arith.constant 0 : i32
    %c0_i32_0 = arith.constant 0 : i32
    %c0_i32_1 = arith.constant 0 : i32
    return %c0_i32, %c0_i32_0 : i32, i32
  }
  func.func @transform_4(%arg0: i32) -> (i32, i32) {
    %c0_i32 = arith.constant 0 : i32
    %c0_i32_0 = arith.constant 0 : i32
    %c0_i32_1 = arith.constant 0 : i32
    return %c0_i32, %c0_i32_0 : i32, i32
  }
  func.func @transform_5(%arg0: i32) -> (i32, i32) {
    %c0_i32 = arith.constant 0 : i32
    %c0_i32_0 = arith.constant 0 : i32
    %c0_i32_1 = arith.constant 0 : i32
    return %c0_i32, %c0_i32_0 : i32, i32
  }
  func.func @transform_6(%arg0: i32) -> (i32, i32) {
    %c0_i32 = arith.constant 0 : i32
    %c0_i32_0 = arith.constant 0 : i32
    %c0_i32_1 = arith.constant 0 : i32
    return %c0_i32, %c0_i32_0 : i32, i32
  }
  func.func @transform_7(%arg0: i32) -> (i32, i32) {
    %c0_i32 = arith.constant 0 : i32
    %c0_i32_0 = arith.constant 0 : i32
    %c0_i32_1 = arith.constant 0 : i32
    return %c0_i32, %c0_i32_0 : i32, i32
  }
  func.func @transform_8(%arg0: i32) -> (i32, i32) {
    %c0_i32 = arith.constant 0 : i32
    %c0_i32_0 = arith.constant 0 : i32
    %c0_i32_1 = arith.constant 0 : i32
    return %c0_i32, %c0_i32_0 : i32, i32
  }
  func.func @transform_9(%arg0: i32) -> (i32, i32) {
    %c0_i32 = arith.constant 0 : i32
    %c0_i32_0 = arith.constant 0 : i32
    return %c0_i32, %arg0 : i32, i32
  }
}

</mosaic_0001>

<bundles_post_ra>
// kernel: mlp_uint_forward.1
= control target key start
LH: loop header
LB: loop body
LE: loop exit
PB: predicated region body
PF: predicated region fallthrough
CT: control target
= control target key end

     0   :  { %vm62_vm0 = vcmask 130048   ;;  %v601_v3 = vmov 0   ;;  %vm192_vm1 = vcmask 261120   ;;  %v602_v61 = vmov 0.0|0.0   ;;  %s741_s0 = inlined_call_operand.vmem [shape: f32[16,128], index: 0, kind: input, shape index: {}]   ;;  %s742_s1 = inlined_call_operand.vmem [shape: f32[32,16], index: 1, kind: input, shape index: {}]   ;;  %s743_s2 = inlined_call_operand.vmem [shape: f32[32,1], index: 2, kind: input, shape index: {}]   ;;  %s744_s4 = inlined_call_operand.vmem [shape: f32[32,1], index: 4, kind: input, shape index: {}]   ;;  %s745_s6 = inlined_call_operand.vmem [shape: f32[16,1], index: 6, kind: input, shape index: {}]   ;;  %s746_s8 = inlined_call_operand.vmem [shape: f32[8,1], index: 8, kind: input, shape index: {}]   ;;  %s747_s3 = inlined_call_operand.vmem [shape: f32[32,32], index: 3, kind: input, shape index: {}]   ;;  %s748_s5 = inlined_call_operand.vmem [shape: f32[16,32], index: 5, kind: input, shape index: {}]   ;;  %s749_s7 = inlined_call_operand.vmem [shape: f32[8,16], index: 7, kind: input, shape index: {}]   ;;  %s750_s9 = inlined_call_operand.vmem [shape: f32[8,128], index: 9, kind: output, shape index: {}]  }
   0x1   :  { %v32_v0 = vld [vmem:[%s741_s0] sm:$0xff]  ;;  %v33_v1 = vld [vmem:[%s741_s0 + $0x8] sm:$0xff]  ;;  %579 = vset.pattern.permute.xlu0 %v601_v3  ;;  %580 = vset.pattern.permute.xlu1 %v601_v3  ;;  %v40_v6 = vld [vmem:[%s743_s2 + $0x10] sm:$0xff]  ;;  %vm603_vm2 = vmmov 0   ;;  %v604_v62 = vmov 0.0  }
   0x2   :  { %v34_v2 = vld [vmem:[%s742_s1] sm:$0xff]  ;;  %v552_v4 = vpack.c.bf16 %v33_v1, %v32_v0  ;;  %v35_v7 = vld [vmem:[%s742_s1 + $0x8] sm:$0xff]  ;;  %54 = vperm.xlu1 %580, %v40_v6   ;;  %v36_v9 = vld [vmem:[%s742_s1 + $0x10] sm:$0xff] }
   0x3   :  { %514 = vmatprep.mubr.msk.f32.mxu0 %vm62_vm0, %v34_v2  ;;  %v38_v5 = vld [vmem:[%s743_s2] sm:$0xff]  ;;  %v39_v8 = vld [vmem:[%s743_s2 + $0x8] sm:$0xff]  ;;  %v41_v10 = vld [vmem:[%s743_s2 + $0x18] sm:$0xff] }
   0x4   :  { %553 = vmatprep.subr.bf16.mxu0 %v552_v4  ;;  %44 = vperm.xlu0 %579, %v38_v5   ;;  %v37_v11 = vld [vmem:[%s742_s1 + $0x18] sm:$0xff]  ;;  %v168_v12 = vld [vmem:[%s744_s4] sm:$0xff]  ;;  %v169_v13 = vld [vmem:[%s744_s4 + $0x8] sm:$0xff] }
   0x5   :  { %555 = vmatpush3.bf16.msra.mxu0 %v552_v4  ;;  %v170_v14 = vld [vmem:[%s744_s4 + $0x10] sm:$0xff]  ;;  %v171_v15 = vld [vmem:[%s744_s4 + $0x18] sm:$0xff]  ;;  %v296_v16 = vld [vmem:[%s745_s6] sm:$0xff] }
   0x6   :  { %59 = vperm.xlu1 %580, %v41_v10   ;;  %v297_v17 = vld [vmem:[%s745_s6 + $0x8] sm:$0xff]  ;;  %v392_v18 = vld [vmem:[%s746_s8] sm:$0xff]  ;;  %v166_v39 = vld [vmem:[%s747_s3 + $0x10] sm:$0xff] }
   0x7   :  { %v164_v19 = vld [vmem:[%s747_s3] sm:$0xff]  ;;  %v165_v38 = vld [vmem:[%s747_s3 + $0x8] sm:$0xff]  ;;  %v167_v40 = vld [vmem:[%s747_s3 + $0x18] sm:$0xff] }
   0x8   :  { %515 = vmatmul.mubr.msk.f32.vlgmr.msra.gmra.mrb[0].mxu0 %vm62_vm0, %v35_v7  ;;  %49 = vperm.xlu0 %579, %v39_v8   ;;  %v294_v41 = vld [vmem:[%s748_s5] sm:$0xff]  ;;  %v295_v60 = vld [vmem:[%s748_s5 + $0x8] sm:$0xff] }
   0x9   :  { %517 = vmatprep.mubr.msk.f32.mxu0 %vm62_vm0, %v36_v9  ;;  %528 = vmatprep.mubr.msk.f32.mxu1 %vm192_vm1, %v164_v19  ;;  %v391_v8 = vld [vmem:[%s749_s7] sm:$0xff] }
   0xa   :  { %179 = vperm.xlu1 %580, %v169_v13  }
   0xc   :  { %518 = vmatmul.mubr.msk.f32.gmra.mrb[2].mxu0 %vm62_vm0, %v37_v11  ;;  %174 = vperm.xlu0 %579, %v168_v12  }
   0xd   :  { %542 = vmatprep.mubr.msk.f32.mxu0 %vm192_vm1, %v294_v41 }
   0xe   :  { %189 = vperm.xlu1 %580, %v171_v15  }
  0x10   :  { %184 = vperm.xlu0 %579, %v170_v14  }
  0x12   :  { %305 = vperm.xlu1 %580, %v297_v17  }
  0x14   :  { %300 = vperm.xlu0 %579, %v296_v16  }
  0x18   :  { %395 = vperm.xlu0 %579, %v392_v18  }
  0x81   :  { %v55_v21 = vpop.permute.xlu1 %54 }
  0x83   :  { %v45_v20 = vpop.permute.xlu0 %44 }
  0x85   :  { %v60_v27 = vpop.permute.xlu1 %59 }
  0x87   :  { %v50_v22 = vpop.permute.xlu0 %49 }
  0x89   :  { %v180_v42 = vpop.permute.xlu1 %179 }
  0x8b   :  { %v175_v43 = vpop.permute.xlu0 %174 }
  0x8d   :  { %v190_v48 = vpop.permute.xlu1 %189 }
  0x8f   :  { %v185_v50 = vpop.permute.xlu0 %184 }
  0x91   :  { %v306_v63 = vpop.permute.xlu1 %305 }
  0x93   :  { %v301_v1 = vpop.permute.xlu0 %300 }
  0x97   :  { %v396_v9 = vpop.permute.xlu0 %395 }
  0xdb   :  { %v516_v23 = vpop.f32.mrb[0].mxu0 }
  0xdc   :  { %v147_v24 = vadd.f32 %v516_v23, %v50_v22  ;;  %v141_v25 = vpop.f32.mrb[1].mxu0 }
  0xdd   :  { %v142_v26 = vadd.f32 %v141_v25, %v45_v20 }
  0xde   :  { %581 = vtanh.f32 %v147_v24 }
  0xdf   :  { %583 = vtanh.f32 %v142_v26  ;;  %v519_v28 = vpop.f32.mrb[2].mxu0 }
  0xe0   :  { %v157_v29 = vadd.f32 %v519_v28, %v60_v27  ;;  %v151_v30 = vpop.f32.mrb[3].mxu0 }
  0xe1   :  { %v152_v31 = vadd.f32 %v151_v30, %v55_v21 }
  0xe2   :  { %585 = vtanh.f32 %v157_v29 }
  0xe3   :  { %587 = vtanh.f32 %v152_v31 }
  0xe8   :  { %v582_v32 = vpop.eup %581 }
  0xe9   :  { %v584_v33 = vpop.eup %583 }
  0xea   :  { %v556_v34 = vpack.c.bf16 %v582_v32, %v584_v33 }
  0xec   :  { %v586_v35 = vpop.eup %585  ;;  %557 = vmatprep.subr.bf16.mxu1 %v556_v34 }
  0xed   :  { %v588_v36 = vpop.eup %587  ;;  %559 = vmatpush3.bf16.msra.mxu1 %v556_v34 }
  0xee   :  { %v560_v37 = vpack.c.bf16 %v586_v35, %v588_v36 }
  0xf0   :  { %561 = vmatprep.subr.bf16.mxu1 %v560_v37 }
  0xf1   :  { %563 = vmatpush3.bf16.msra.mxu1 %v560_v37 }
  0xf4   :  { %529 = vmatmul.mubr.msk.f32.vlgmr.msra.gmra.mrb[0].mxu1 %vm192_vm1, %v165_v38 }
  0xf5   :  { %531 = vmatprep.mubr.msk.f32.mxu1 %vm192_vm1, %v166_v39 }
  0xf8   :  { %532 = vmatmul.mubr.msk.f32.gmra.mrb[2].mxu1 %vm192_vm1, %v167_v40 }
 0x1c7   :  { %v530_v44 = vpop.f32.mrb[0].mxu1 }
 0x1c8   :  { %v277_v45 = vadd.f32 %v530_v44, %v180_v42  ;;  %v271_v46 = vpop.f32.mrb[1].mxu1 }
 0x1c9   :  { %v272_v47 = vadd.f32 %v271_v46, %v175_v43 }
 0x1ca   :  { %589 = vtanh.f32 %v277_v45 }
 0x1cb   :  { %591 = vtanh.f32 %v272_v47  ;;  %v533_v49 = vpop.f32.mrb[2].mxu1 }
 0x1cc   :  { %v287_v51 = vadd.f32 %v533_v49, %v190_v48  ;;  %v281_v52 = vpop.f32.mrb[3].mxu1 }
 0x1cd   :  { %v282_v53 = vadd.f32 %v281_v52, %v185_v50 }
 0x1ce   :  { %593 = vtanh.f32 %v287_v51 }
 0x1cf   :  { %595 = vtanh.f32 %v282_v53 }
 0x1d4   :  { %v590_v54 = vpop.eup %589 }
 0x1d5   :  { %v592_v55 = vpop.eup %591 }
 0x1d6   :  { %v564_v56 = vpack.c.bf16 %v590_v54, %v592_v55 }
 0x1d8   :  { %v594_v57 = vpop.eup %593  ;;  %565 = vmatprep.subr.bf16.mxu0 %v564_v56 }
 0x1d9   :  { %v596_v58 = vpop.eup %595  ;;  %567 = vmatpush3.bf16.msra.mxu0 %v564_v56 }
 0x1da   :  { %v568_v59 = vpack.c.bf16 %v594_v57, %v596_v58 }
 0x1dc   :  { %569 = vmatprep.subr.bf16.mxu0 %v568_v59 }
 0x1dd   :  { %571 = vmatpush3.bf16.msra.mxu0 %v568_v59 }
 0x1de   :  { %572 = vmatprep.subr.bf16.mxu0 %v602_v61 }
 0x1e0   :  { %543 = vmatmul.mubr.msk.f32.vlgmr.msra.gmra.mrb[4].mxu0 %vm192_vm1, %v295_v60 }
 0x1e1   :  { %549 = vmatprep.mubr.msk.f32.mxu0 %vm603_vm2, %v604_v62 }
 0x2b3   :  { %v544_v0 = vpop.f32.mrb[4].mxu0 }
 0x2b4   :  { %v386_v2 = vadd.f32 %v544_v0, %v306_v63  ;;  %v380_v3 = vpop.f32.mrb[5].mxu0 }
 0x2b5   :  { %v381_v4 = vadd.f32 %v380_v3, %v301_v1 }
 0x2b6   :  { %597 = vtanh.f32 %v386_v2 }
 0x2b7   :  { %599 = vtanh.f32 %v381_v4 }
 0x2c0   :  { %v598_v5 = vpop.eup %597 }
 0x2c1   :  { %v600_v6 = vpop.eup %599 }
 0x2c2   :  { %v573_v7 = vpack.c.bf16 %v598_v5, %v600_v6 }
 0x2c4   :  { %574 = vmatpush3.bf16.msra.mxu0 %v573_v7 }
 0x2c7   :  { %550 = vmatmul.mubr.msk.f32.vlgmr.msra.gmra.mrb[6].mxu0 %vm62_vm0, %v391_v8 }
 0x39a   :  { %v467_v10 = vpop.f32.mrb[6].mxu0 }
 0x39b   :  { %v468_v11 = vadd.f32 %v467_v10, %v396_v9  ;;  %v551_v12 = vpop.f32.mrb[7].mxu0 }
 0x39d   :  { %471 = vst [vmem:[%s750_s9] sm:$0xff] %v468_v11 }

</bundles_post_ra>
